<compile_context>
chip_gen: v6e
topology: v6e:2x2x1
jax: 0.10.0
libtpu: 0.0.40
codegen_flags: <defaults>
</compile_context>

<pallas_src>
import math
import jax
import jax.numpy as jnp
from jax.experimental import pallas as pl
from jax.experimental.pallas import tpu as pltpu

# ---- problem sizes (small, consistent with the module) ----------------------
B = 2          # batch
S = 8          # sequence length
D = 32         # d_model
H = 4          # n_heads
DH = D // H    # head dim
F = 64         # d_ff
EPS = 1e-5     # nn.LayerNorm default eps

BS = B * S     # flattened token count
LANES = 128    # param-slab lane width


def _layernorm(x, gamma, beta):
    mu = jnp.mean(x, axis=-1, keepdims=True)
    var = jnp.mean((x - mu) ** 2, axis=-1, keepdims=True)
    return (x - mu) * jax.lax.rsqrt(var + EPS) * gamma + beta


def encoder_block_kernel(x_ref, bias_ref, wa_ref, w2_ref, p_ref, out_ref):
    x = x_ref[...]            # (BS, D)
    bias = bias_ref[...]      # (BS, BS) additive mask (0 / -1e9)
    wa = wa_ref[...]          # (D, 3D + D + F) = Wqkv | Wo | W1
    p = p_ref[...]            # (8, 128) packed 1-row params

    wqkv = wa[:, 0:3 * D]             # (D, 3D), Wq already scaled by 1/sqrt(DH)
    wo = wa[:, 3 * D:4 * D]           # (D, D)
    w1 = wa[:, 4 * D:4 * D + F]       # (D, F)

    bqkv = p[0:1, 0:3 * D]
    bo = p[1:2, 0:D]
    b1 = p[2:3, 0:F]
    b2 = p[3:4, 0:D]
    g1 = p[4:5, 0:D]
    be1 = p[5:6, 0:D]
    g2 = p[6:7, 0:D]
    be2 = p[7:8, 0:D]

    # --- fused QKV projection (one matmul for the whole batch) ---------------
    qkv = jnp.dot(x, wqkv, preferred_element_type=jnp.float32) + bqkv  # (BS, 3D)
    q = qkv[:, 0:D]
    k = qkv[:, D:2 * D]
    v = qkv[:, 2 * D:3 * D]

    # --- multi-head attention: both batch elements at once per head ----------
    # The additive bias masks both the padded keys and the cross-batch blocks
    # (exp underflows to exactly 0), so one (BS, BS) softmax per head is exact.
    heads = []
    for h in range(H):                               # static unroll over heads
        sl = slice(h * DH, (h + 1) * DH)
        qh, kh, vh = q[:, sl], k[:, sl], v[:, sl]
        s = jax.lax.dot_general(qh, kh, (((1,), (1,)), ((), ())),
                                preferred_element_type=jnp.float32)  # (BS, BS)
        s = s + bias
        m = jnp.max(s, axis=-1, keepdims=True)
        e = jnp.exp(s - m)
        denom = jnp.sum(e, axis=-1, keepdims=True)
        pattn = e * pl.reciprocal(denom, approx=True)
        heads.append(jnp.dot(pattn, vh, preferred_element_type=jnp.float32))

    concat_o = jnp.concatenate(heads, axis=-1)                       # (BS, D)
    attn = jnp.dot(concat_o, wo, preferred_element_type=jnp.float32) + bo

    # --- residual + layernorm 1 (dropout1 = identity in eval) ----------------
    h1 = _layernorm(x + attn, g1, be1)

    # --- position-wise feed forward (dropout inside FFN = identity) ----------
    f = jnp.dot(h1, w1, preferred_element_type=jnp.float32) + b1
    f = jnp.maximum(f, 0.0)
    f = jnp.dot(f, w2_ref[...], preferred_element_type=jnp.float32) + b2

    # --- residual + layernorm 2 (dropout2 = identity in eval) ----------------
    out_ref[...] = _layernorm(h1 + f, g2, be2)


def encoder_block(x, mask, params):
    (wq, bq, wk, bk, wv, bv, wo, bo, w1, b1, w2, b2, g1, be1, g2, be2) = params

    # fold 1/sqrt(d_head) into Wq/bq (exact), fuse QKV, pack Wqkv|Wo|W1.
    scale = 1.0 / math.sqrt(DH)
    wqkv = jnp.concatenate([wq * scale, wk, wv], axis=1)             # (D, 3D)
    bqkv = jnp.concatenate([bq * scale, bk, bv], axis=1)             # (1, 3D)
    w_a = jnp.concatenate([wqkv, wo, w1], axis=1)                    # (D, 192)

    # pack all 1-row parameters into one (8, 128) slab.
    def pad_row(v):
        return jnp.pad(v, ((0, 0), (0, LANES - v.shape[1])))
    pslab = jnp.concatenate(
        [pad_row(bqkv), pad_row(bo), pad_row(b1), pad_row(b2),
         pad_row(g1), pad_row(be1), pad_row(g2), pad_row(be2)], axis=0)  # (8,128)

    # flatten activations; build additive attention bias once:
    #   0 where (same batch AND key allowed), -1e9 otherwise.
    x2d = x.reshape(BS, D)
    key_mask = mask[:, 0, :]                                         # (B, S)
    allow = jnp.eye(B, dtype=jnp.float32)[:, :, None] * key_mask[None, :, :]
    allow = jnp.broadcast_to(allow[:, None, :, :], (B, S, B, S)).reshape(BS, BS)
    mask_bias = (allow - 1.0) * 1e9                                  # (BS, BS)

    vmem_spec = lambda: pl.BlockSpec(memory_space=pltpu.MemorySpace.VMEM)

    out2d = pl.pallas_call(
        encoder_block_kernel,
        out_shape=jax.ShapeDtypeStruct((BS, D), jnp.float32),
        in_specs=[vmem_spec() for _ in range(5)],
        out_specs=vmem_spec(),
    )(x2d, mask_bias, w_a, w2, pslab)

    return out2d.reshape(B, S, D)


def init_params(key):
    ks = jax.random.split(key, 6)
    scale = 0.02
    wq = scale * jax.random.normal(ks[0], (D, D), jnp.float32)
    wk = scale * jax.random.normal(ks[1], (D, D), jnp.float32)
    wv = scale * jax.random.normal(ks[2], (D, D), jnp.float32)
    wo = scale * jax.random.normal(ks[3], (D, D), jnp.float32)
    w1 = scale * jax.random.normal(ks[4], (D, F), jnp.float32)
    w2 = scale * jax.random.normal(ks[5], (F, D), jnp.float32)
    zeros_d = jnp.zeros((1, D), jnp.float32)
    zeros_f = jnp.zeros((1, F), jnp.float32)
    ones_d = jnp.ones((1, D), jnp.float32)
    return (wq, zeros_d, wk, zeros_d, wv, zeros_d, wo, zeros_d,
            w1, zeros_f, w2, zeros_d,
            ones_d, zeros_d,   # layer_norm1 gamma/beta
            ones_d, zeros_d)   # layer_norm2 gamma/beta


if __name__ == "__main__":
    key = jax.random.PRNGKey(0)
    kx, kp = jax.random.split(key)
    x = jax.random.normal(kx, (B, S, D), jnp.float32)
    # src_mask: 1 = attend, 0 = masked.  Mask the last two key positions of
    # batch element 1 to exercise the masking path.
    mask = jnp.ones((B, 1, S), jnp.float32).at[1, 0, -2:].set(0.0)
    params = init_params(kp)

    out = encoder_block(x, mask, params)
    jax.block_until_ready(out)
    assert out.shape == (B, S, D) and out.dtype == jnp.float32
    print("KERNEL_OK")
</pallas_src>

<mosaic_0001>
module attributes {stable_mosaic.version = 11 : i64} {
  func.func @encoder_block_kernel(%arg0: memref<16x32xf32, #tpu.memory_space<vmem>>, %arg1: memref<16x16xf32, #tpu.memory_space<vmem>>, %arg2: memref<32x192xf32, #tpu.memory_space<vmem>>, %arg3: memref<64x32xf32, #tpu.memory_space<vmem>>, %arg4: memref<8x128xf32, #tpu.memory_space<vmem>>, %arg5: memref<16x32xf32, #tpu.memory_space<vmem>>) attributes {dimension_semantics = [], scalar_prefetch = 0 : i64, scratch_operands = 0 : i64, tpu.core_type = #tpu.core_type<tc>} {
    %c0 = arith.constant 0 : index
    %c0_0 = arith.constant 0 : index
    %0 = vector.load %arg0[%c0, %c0_0] : memref<16x32xf32, #tpu.memory_space<vmem>>, vector<16x32xf32>
    %c0_1 = arith.constant 0 : index
    %c0_2 = arith.constant 0 : index
    %1 = vector.load %arg1[%c0_1, %c0_2] : memref<16x16xf32, #tpu.memory_space<vmem>>, vector<16x16xf32>
    %c0_3 = arith.constant 0 : index
    %c0_4 = arith.constant 0 : index
    %2 = vector.load %arg2[%c0_3, %c0_4] : memref<32x192xf32, #tpu.memory_space<vmem>>, vector<32x192xf32>
    %c0_5 = arith.constant 0 : index
    %c0_6 = arith.constant 0 : index
    %3 = vector.load %arg4[%c0_5, %c0_6] : memref<8x128xf32, #tpu.memory_space<vmem>>, vector<8x128xf32>
    %4 = vector.extract_strided_slice %2 {offsets = [0, 0], sizes = [32, 96], strides = [1, 1]} : vector<32x192xf32> to vector<32x96xf32>
    %5 = vector.extract_strided_slice %2 {offsets = [0, 96], sizes = [32, 32], strides = [1, 1]} : vector<32x192xf32> to vector<32x32xf32>
    %6 = vector.extract_strided_slice %2 {offsets = [0, 128], sizes = [32, 64], strides = [1, 1]} : vector<32x192xf32> to vector<32x64xf32>
    %7 = vector.extract_strided_slice %3 {offsets = [0, 0], sizes = [1, 96], strides = [1, 1]} : vector<8x128xf32> to vector<1x96xf32>
    %8 = vector.extract_strided_slice %3 {offsets = [1, 0], sizes = [1, 32], strides = [1, 1]} : vector<8x128xf32> to vector<1x32xf32>
    %9 = vector.extract_strided_slice %3 {offsets = [2, 0], sizes = [1, 64], strides = [1, 1]} : vector<8x128xf32> to vector<1x64xf32>
    %10 = vector.extract_strided_slice %3 {offsets = [3, 0], sizes = [1, 32], strides = [1, 1]} : vector<8x128xf32> to vector<1x32xf32>
    %11 = vector.extract_strided_slice %3 {offsets = [4, 0], sizes = [1, 32], strides = [1, 1]} : vector<8x128xf32> to vector<1x32xf32>
    %12 = vector.extract_strided_slice %3 {offsets = [5, 0], sizes = [1, 32], strides = [1, 1]} : vector<8x128xf32> to vector<1x32xf32>
    %13 = vector.extract_strided_slice %3 {offsets = [6, 0], sizes = [1, 32], strides = [1, 1]} : vector<8x128xf32> to vector<1x32xf32>
    %14 = vector.extract_strided_slice %3 {offsets = [7, 0], sizes = [1, 32], strides = [1, 1]} : vector<8x128xf32> to vector<1x32xf32>
    %cst = arith.constant dense<0.000000e+00> : vector<16x96xf32>
    %15 = tpu.matmul %0, %4, %cst {dimension_numbers = #tpu.dot_dimension_numbers<[1], [0], [0], [1], [0, 0, 1, 1], [], []>} : vector<16x32xf32>, vector<32x96xf32>, vector<16x96xf32> -> vector<16x96xf32>
    %16 = vector.broadcast %7 : vector<1x96xf32> to vector<16x96xf32>
    %17 = arith.addf %15, %16 : vector<16x96xf32>
    %18 = vector.extract_strided_slice %17 {offsets = [0, 0], sizes = [16, 32], strides = [1, 1]} : vector<16x96xf32> to vector<16x32xf32>
    %19 = vector.extract_strided_slice %17 {offsets = [0, 32], sizes = [16, 32], strides = [1, 1]} : vector<16x96xf32> to vector<16x32xf32>
    %20 = vector.extract_strided_slice %17 {offsets = [0, 64], sizes = [16, 32], strides = [1, 1]} : vector<16x96xf32> to vector<16x32xf32>
    %21 = vector.extract_strided_slice %18 {offsets = [0, 0], sizes = [16, 8], strides = [1, 1]} : vector<16x32xf32> to vector<16x8xf32>
    %22 = vector.extract_strided_slice %19 {offsets = [0, 0], sizes = [16, 8], strides = [1, 1]} : vector<16x32xf32> to vector<16x8xf32>
    %23 = vector.extract_strided_slice %20 {offsets = [0, 0], sizes = [16, 8], strides = [1, 1]} : vector<16x32xf32> to vector<16x8xf32>
    %cst_7 = arith.constant dense<0.000000e+00> : vector<16x16xf32>
    %24 = tpu.matmul %21, %22, %cst_7 {dimension_numbers = #tpu.dot_dimension_numbers<[1], [1], [0], [0], [0, 0, 1, 0], [], []>} : vector<16x8xf32>, vector<16x8xf32>, vector<16x16xf32> -> vector<16x16xf32>
    %25 = arith.addf %24, %1 : vector<16x16xf32>
    %cst_8 = arith.constant dense<0xFF800000> : vector<16xf32>
    %26 = vector.multi_reduction <maximumf>, %25, %cst_8 [1] : vector<16x16xf32> to vector<16xf32>
    %27 = vector.shape_cast %26 : vector<16xf32> to vector<16x1xf32>
    %28 = vector.broadcast %27 : vector<16x1xf32> to vector<16x16xf32>
    %29 = arith.subf %25, %28 : vector<16x16xf32>
    %30 = math.exp %29 : vector<16x16xf32>
    %cst_9 = arith.constant dense<0.000000e+00> : vector<16xf32>
    %31 = vector.multi_reduction <add>, %30, %cst_9 [1] : vector<16x16xf32> to vector<16xf32>
    %32 = vector.shape_cast %31 : vector<16xf32> to vector<16x1xf32>
    %33 = tpu.reciprocal %32 {approx = true} : vector<16x1xf32> -> vector<16x1xf32>
    %34 = vector.broadcast %33 : vector<16x1xf32> to vector<16x16xf32>
    %35 = arith.mulf %30, %34 : vector<16x16xf32>
    %cst_10 = arith.constant dense<0.000000e+00> : vector<16x8xf32>
    %36 = tpu.matmul %35, %23, %cst_10 {dimension_numbers = #tpu.dot_dimension_numbers<[1], [0], [0], [1], [0, 0, 1, 1], [], []>} : vector<16x16xf32>, vector<16x8xf32>, vector<16x8xf32> -> vector<16x8xf32>
    %37 = vector.extract_strided_slice %18 {offsets = [0, 8], sizes = [16, 8], strides = [1, 1]} : vector<16x32xf32> to vector<16x8xf32>
    %38 = vector.extract_strided_slice %19 {offsets = [0, 8], sizes = [16, 8], strides = [1, 1]} : vector<16x32xf32> to vector<16x8xf32>
    %39 = vector.extract_strided_slice %20 {offsets = [0, 8], sizes = [16, 8], strides = [1, 1]} : vector<16x32xf32> to vector<16x8xf32>
    %cst_11 = arith.constant dense<0.000000e+00> : vector<16x16xf32>
    %40 = tpu.matmul %37, %38, %cst_11 {dimension_numbers = #tpu.dot_dimension_numbers<[1], [1], [0], [0], [0, 0, 1, 0], [], []>} : vector<16x8xf32>, vector<16x8xf32>, vector<16x16xf32> -> vector<16x16xf32>
    %41 = arith.addf %40, %1 : vector<16x16xf32>
    %cst_12 = arith.constant dense<0xFF800000> : vector<16xf32>
    %42 = vector.multi_reduction <maximumf>, %41, %cst_12 [1] : vector<16x16xf32> to vector<16xf32>
    %43 = vector.shape_cast %42 : vector<16xf32> to vector<16x1xf32>
    %44 = vector.broadcast %43 : vector<16x1xf32> to vector<16x16xf32>
    %45 = arith.subf %41, %44 : vector<16x16xf32>
    %46 = math.exp %45 : vector<16x16xf32>
    %cst_13 = arith.constant dense<0.000000e+00> : vector<16xf32>
    %47 = vector.multi_reduction <add>, %46, %cst_13 [1] : vector<16x16xf32> to vector<16xf32>
    %48 = vector.shape_cast %47 : vector<16xf32> to vector<16x1xf32>
    %49 = tpu.reciprocal %48 {approx = true} : vector<16x1xf32> -> vector<16x1xf32>
    %50 = vector.broadcast %49 : vector<16x1xf32> to vector<16x16xf32>
    %51 = arith.mulf %46, %50 : vector<16x16xf32>
    %cst_14 = arith.constant dense<0.000000e+00> : vector<16x8xf32>
    %52 = tpu.matmul %51, %39, %cst_14 {dimension_numbers = #tpu.dot_dimension_numbers<[1], [0], [0], [1], [0, 0, 1, 1], [], []>} : vector<16x16xf32>, vector<16x8xf32>, vector<16x8xf32> -> vector<16x8xf32>
    %53 = vector.extract_strided_slice %18 {offsets = [0, 16], sizes = [16, 8], strides = [1, 1]} : vector<16x32xf32> to vector<16x8xf32>
    %54 = vector.extract_strided_slice %19 {offsets = [0, 16], sizes = [16, 8], strides = [1, 1]} : vector<16x32xf32> to vector<16x8xf32>
    %55 = vector.extract_strided_slice %20 {offsets = [0, 16], sizes = [16, 8], strides = [1, 1]} : vector<16x32xf32> to vector<16x8xf32>
    %cst_15 = arith.constant dense<0.000000e+00> : vector<16x16xf32>
    %56 = tpu.matmul %53, %54, %cst_15 {dimension_numbers = #tpu.dot_dimension_numbers<[1], [1], [0], [0], [0, 0, 1, 0], [], []>} : vector<16x8xf32>, vector<16x8xf32>, vector<16x16xf32> -> vector<16x16xf32>
    %57 = arith.addf %56, %1 : vector<16x16xf32>
    %cst_16 = arith.constant dense<0xFF800000> : vector<16xf32>
    %58 = vector.multi_reduction <maximumf>, %57, %cst_16 [1] : vector<16x16xf32> to vector<16xf32>
    %59 = vector.shape_cast %58 : vector<16xf32> to vector<16x1xf32>
    %60 = vector.broadcast %59 : vector<16x1xf32> to vector<16x16xf32>
    %61 = arith.subf %57, %60 : vector<16x16xf32>
    %62 = math.exp %61 : vector<16x16xf32>
    %cst_17 = arith.constant dense<0.000000e+00> : vector<16xf32>
    %63 = vector.multi_reduction <add>, %62, %cst_17 [1] : vector<16x16xf32> to vector<16xf32>
    %64 = vector.shape_cast %63 : vector<16xf32> to vector<16x1xf32>
    %65 = tpu.reciprocal %64 {approx = true} : vector<16x1xf32> -> vector<16x1xf32>
    %66 = vector.broadcast %65 : vector<16x1xf32> to vector<16x16xf32>
    %67 = arith.mulf %62, %66 : vector<16x16xf32>
    %cst_18 = arith.constant dense<0.000000e+00> : vector<16x8xf32>
    %68 = tpu.matmul %67, %55, %cst_18 {dimension_numbers = #tpu.dot_dimension_numbers<[1], [0], [0], [1], [0, 0, 1, 1], [], []>} : vector<16x16xf32>, vector<16x8xf32>, vector<16x8xf32> -> vector<16x8xf32>
    %69 = vector.extract_strided_slice %18 {offsets = [0, 24], sizes = [16, 8], strides = [1, 1]} : vector<16x32xf32> to vector<16x8xf32>
    %70 = vector.extract_strided_slice %19 {offsets = [0, 24], sizes = [16, 8], strides = [1, 1]} : vector<16x32xf32> to vector<16x8xf32>
    %71 = vector.extract_strided_slice %20 {offsets = [0, 24], sizes = [16, 8], strides = [1, 1]} : vector<16x32xf32> to vector<16x8xf32>
    %cst_19 = arith.constant dense<0.000000e+00> : vector<16x16xf32>
    %72 = tpu.matmul %69, %70, %cst_19 {dimension_numbers = #tpu.dot_dimension_numbers<[1], [1], [0], [0], [0, 0, 1, 0], [], []>} : vector<16x8xf32>, vector<16x8xf32>, vector<16x16xf32> -> vector<16x16xf32>
    %73 = arith.addf %72, %1 : vector<16x16xf32>
    %cst_20 = arith.constant dense<0xFF800000> : vector<16xf32>
    %74 = vector.multi_reduction <maximumf>, %73, %cst_20 [1] : vector<16x16xf32> to vector<16xf32>
    %75 = vector.shape_cast %74 : vector<16xf32> to vector<16x1xf32>
    %76 = vector.broadcast %75 : vector<16x1xf32> to vector<16x16xf32>
    %77 = arith.subf %73, %76 : vector<16x16xf32>
    %78 = math.exp %77 : vector<16x16xf32>
    %cst_21 = arith.constant dense<0.000000e+00> : vector<16xf32>
    %79 = vector.multi_reduction <add>, %78, %cst_21 [1] : vector<16x16xf32> to vector<16xf32>
    %80 = vector.shape_cast %79 : vector<16xf32> to vector<16x1xf32>
    %81 = tpu.reciprocal %80 {approx = true} : vector<16x1xf32> -> vector<16x1xf32>
    %82 = vector.broadcast %81 : vector<16x1xf32> to vector<16x16xf32>
    %83 = arith.mulf %78, %82 : vector<16x16xf32>
    %cst_22 = arith.constant dense<0.000000e+00> : vector<16x8xf32>
    %84 = tpu.matmul %83, %71, %cst_22 {dimension_numbers = #tpu.dot_dimension_numbers<[1], [0], [0], [1], [0, 0, 1, 1], [], []>} : vector<16x16xf32>, vector<16x8xf32>, vector<16x8xf32> -> vector<16x8xf32>
    %85 = tpu.concatenate %36, %52, %68, %84 in 1 : vector<16x8xf32>, vector<16x8xf32>, vector<16x8xf32>, vector<16x8xf32> -> vector<16x32xf32>
    %cst_23 = arith.constant dense<0.000000e+00> : vector<16x32xf32>
    %86 = tpu.matmul %85, %5, %cst_23 {dimension_numbers = #tpu.dot_dimension_numbers<[1], [0], [0], [1], [0, 0, 1, 1], [], []>} : vector<16x32xf32>, vector<32x32xf32>, vector<16x32xf32> -> vector<16x32xf32>
    %87 = vector.broadcast %8 : vector<1x32xf32> to vector<16x32xf32>
    %88 = arith.addf %86, %87 : vector<16x32xf32>
    %89 = arith.addf %0, %88 : vector<16x32xf32>
    %cst_24 = arith.constant dense<0.000000e+00> : vector<16xf32>
    %90 = vector.multi_reduction <add>, %89, %cst_24 [1] : vector<16x32xf32> to vector<16xf32>
    %91 = vector.shape_cast %90 : vector<16xf32> to vector<16x1xf32>
    %cst_25 = arith.constant 3.200000e+01 : f32
    %92 = vector.broadcast %cst_25 : f32 to vector<16x1xf32>
    %93 = arith.divf %91, %92 : vector<16x1xf32>
    %94 = vector.broadcast %93 : vector<16x1xf32> to vector<16x32xf32>
    %95 = arith.subf %89, %94 : vector<16x32xf32>
    %96 = arith.mulf %95, %95 : vector<16x32xf32>
    %cst_26 = arith.constant dense<0.000000e+00> : vector<16xf32>
    %97 = vector.multi_reduction <add>, %96, %cst_26 [1] : vector<16x32xf32> to vector<16xf32>
    %98 = vector.shape_cast %97 : vector<16xf32> to vector<16x1xf32>
    %cst_27 = arith.constant 3.200000e+01 : f32
    %99 = vector.broadcast %cst_27 : f32 to vector<16x1xf32>
    %100 = arith.divf %98, %99 : vector<16x1xf32>
    %101 = vector.broadcast %93 : vector<16x1xf32> to vector<16x32xf32>
    %102 = arith.subf %89, %101 : vector<16x32xf32>
    %cst_28 = arith.constant 9.99999974E-6 : f32
    %103 = vector.broadcast %cst_28 : f32 to vector<16x1xf32>
    %104 = arith.addf %100, %103 : vector<16x1xf32>
    %105 = math.rsqrt %104 : vector<16x1xf32>
    %106 = vector.broadcast %105 : vector<16x1xf32> to vector<16x32xf32>
    %107 = arith.mulf %102, %106 : vector<16x32xf32>
    %108 = vector.broadcast %11 : vector<1x32xf32> to vector<16x32xf32>
    %109 = arith.mulf %107, %108 : vector<16x32xf32>
    %110 = vector.broadcast %12 : vector<1x32xf32> to vector<16x32xf32>
    %111 = arith.addf %109, %110 : vector<16x32xf32>
    %cst_29 = arith.constant dense<0.000000e+00> : vector<16x64xf32>
    %112 = tpu.matmul %111, %6, %cst_29 {dimension_numbers = #tpu.dot_dimension_numbers<[1], [0], [0], [1], [0, 0, 1, 1], [], []>} : vector<16x32xf32>, vector<32x64xf32>, vector<16x64xf32> -> vector<16x64xf32>
    %113 = vector.broadcast %9 : vector<1x64xf32> to vector<16x64xf32>
    %114 = arith.addf %112, %113 : vector<16x64xf32>
    %cst_30 = arith.constant 0.000000e+00 : f32
    %115 = vector.broadcast %cst_30 : f32 to vector<16x64xf32>
    %116 = arith.maximumf %114, %115 : vector<16x64xf32>
    %c0_31 = arith.constant 0 : index
    %c0_32 = arith.constant 0 : index
    %117 = vector.load %arg3[%c0_31, %c0_32] : memref<64x32xf32, #tpu.memory_space<vmem>>, vector<64x32xf32>
    %cst_33 = arith.constant dense<0.000000e+00> : vector<16x32xf32>
    %118 = tpu.matmul %116, %117, %cst_33 {dimension_numbers = #tpu.dot_dimension_numbers<[1], [0], [0], [1], [0, 0, 1, 1], [], []>} : vector<16x64xf32>, vector<64x32xf32>, vector<16x32xf32> -> vector<16x32xf32>
    %119 = vector.broadcast %10 : vector<1x32xf32> to vector<16x32xf32>
    %120 = arith.addf %118, %119 : vector<16x32xf32>
    %121 = arith.addf %111, %120 : vector<16x32xf32>
    %cst_34 = arith.constant dense<0.000000e+00> : vector<16xf32>
    %122 = vector.multi_reduction <add>, %121, %cst_34 [1] : vector<16x32xf32> to vector<16xf32>
    %123 = vector.shape_cast %122 : vector<16xf32> to vector<16x1xf32>
    %cst_35 = arith.constant 3.200000e+01 : f32
    %124 = vector.broadcast %cst_35 : f32 to vector<16x1xf32>
    %125 = arith.divf %123, %124 : vector<16x1xf32>
    %126 = vector.broadcast %125 : vector<16x1xf32> to vector<16x32xf32>
    %127 = arith.subf %121, %126 : vector<16x32xf32>
    %128 = arith.mulf %127, %127 : vector<16x32xf32>
    %cst_36 = arith.constant dense<0.000000e+00> : vector<16xf32>
    %129 = vector.multi_reduction <add>, %128, %cst_36 [1] : vector<16x32xf32> to vector<16xf32>
    %130 = vector.shape_cast %129 : vector<16xf32> to vector<16x1xf32>
    %cst_37 = arith.constant 3.200000e+01 : f32
    %131 = vector.broadcast %cst_37 : f32 to vector<16x1xf32>
    %132 = arith.divf %130, %131 : vector<16x1xf32>
    %133 = vector.broadcast %125 : vector<16x1xf32> to vector<16x32xf32>
    %134 = arith.subf %121, %133 : vector<16x32xf32>
    %cst_38 = arith.constant 9.99999974E-6 : f32
    %135 = vector.broadcast %cst_38 : f32 to vector<16x1xf32>
    %136 = arith.addf %132, %135 : vector<16x1xf32>
    %137 = math.rsqrt %136 : vector<16x1xf32>
    %138 = vector.broadcast %137 : vector<16x1xf32> to vector<16x32xf32>
    %139 = arith.mulf %134, %138 : vector<16x32xf32>
    %140 = vector.broadcast %13 : vector<1x32xf32> to vector<16x32xf32>
    %141 = arith.mulf %139, %140 : vector<16x32xf32>
    %142 = vector.broadcast %14 : vector<1x32xf32> to vector<16x32xf32>
    %143 = arith.addf %141, %142 : vector<16x32xf32>
    %c0_39 = arith.constant 0 : index
    %c0_40 = arith.constant 0 : index
    %144 = vector.load %arg5[%c0_39, %c0_40] : memref<16x32xf32, #tpu.memory_space<vmem>>, vector<16x32xf32>
    tpu.vector_store %arg5[%c0_39, %c0_40], %143 {strides = array<i32>} : memref<16x32xf32, #tpu.memory_space<vmem>>, vector<16x32xf32>,
    return
  }
}

</mosaic_0001>

<bundles_post_ra>
// kernel: tpu_custom_call.1
= control target key start
LH: loop header
LB: loop body
LE: loop exit
PB: predicated region body
PF: predicated region fallthrough
CT: control target
= control target key end

     0   :  { %10 = vsyncpa [#allocation3], 0  ;;  %s1932_s0 = inlined_call_operand.vmem [shape: f32[16,32], index: 0, kind: input, shape index: {}]   ;;  %s1933_s1 = inlined_call_operand.vmem [shape: f32[16,16], index: 1, kind: input, shape index: {}]   ;;  %s1934_s2 = inlined_call_operand.vmem [shape: f32[32,192], index: 2, kind: input, shape index: {}]   ;;  %s1935_s3 = inlined_call_operand.vmem [shape: f32[64,32], index: 3, kind: input, shape index: {}]   ;;  %s1936_s4 = inlined_call_operand.hbm [shape: f32[8,128], index: 4, kind: input, shape index: {}]   ;;  %s1937_s5 = inlined_call_operand.hbm [shape: f32[16,32], index: 5, kind: output, shape index: {}]  }
   0x1   :  { %11 = vsyncpa [#allocation4], 0  ;;  %s1647_s18 = smov [#allocation2]  }
   0x2   :  { %s26_s19 = sshll.u32 %s1647_s18, 4  ;;  %s27_s19 = int_to_ptr.vmem [resolvable:$true] %s26_s19 }
   0x3   :  { %s1611_s20 = scalar_lea.vmem %s27_s19, 128  ;;  %p1616_p1 = scmp.lt.s32.totalorder %s27_s19, %s27_s19 }
   0x4   :  { %p1612_p0 = scmp.ne.s32.totalorder %s27_s19, %s1611_s20  ;;  %p1617_p2 = scmp.lt.s32.totalorder %s1611_s20, %s1611_s20 }
   0x6   :  { %p1618_p3 = por %p1617_p2, %p1616_p1 }
   0x8   :  { %p1619_p4 = pnand %p1618_p3, %p1612_p0 }
   0xa   :  { %1622 = shalt.err (!%p1619_p4)
}
   0xb   :  { %29 = dma.hbm_to_vmem [thread:$0]  %s1936_s4, 128, %s27_s19, [#allocation3]  }
   0xc   :  { %1643 = dma.done.wait [#allocation3], 128  }
   0xd   :  { %1644 = vsyncadd [#allocation3], 4294967168  ;;  %vm50_vm0 = vcmask 261120   ;;  %v1701_v0 = vld [vmem:[%s1934_s2 + $0x30] sm:$0xff]  ;;  %v1706_v1 = vld [vmem:[%s1934_s2 + $0x20] sm:$0xff]  ;;  %v46_v6 = vlaneseq  ;;  %vm138_vm1 = vcmask 64512  }
   0xe   :  { %1437 = vmatprep.subr.mxu1 %v1701_v0  ;;  %v1712_v2 = vld [vmem:[%s1932_s0] sm:$0xff]  ;;  %v1718_v3 = vld [vmem:[%s1934_s2 + $0x10] sm:$0xff]  ;;  %v1734_v5 = vld [vmem:[%s1932_s0 + $0x8] sm:$0xff]  ;;  %s1648_s0 = smov 88   ;;  %s1649_s9 = smov 96   ;;  %vm222_vm2 = vcmask 130048  }
   0xf   :  { %1438 = vmatpush3.msra.mxu1 %v1701_v0  ;;  %1445 = vmatprep.mubr.msk.f32.mxu1 %vm50_vm0, %v1712_v2  ;;  %v1727_v4 = vld [vmem:[%s1934_s2] sm:$0xff]  ;;  %v1740_v7 = vshrl.u32 %v46_v6, 7  ;;  %s1650_s10 = smov 120   ;;  %v1773_v21 = vld [vmem:[%s1933_s1 + $0x8] sm:$0xff]  ;;  %s1652_s15 = smov 56   ;;  %vm960_vm3 = vcmask 195584  }
  0x10   :  { %1439 = vmatprep.subr.mxu1 %v1706_v1  ;;  %v1743_v9 = vld [vmem:[#allocation2] sm:$0xff]  ;;  %s1653_s16 = smov 80   ;;  %s1654_s17 = smov 112   ;;  %vm1204_vm4 = vcmask 523264  }
  0x11   :  { %1440 = vmatpush3.msra.mxu1 %v1706_v1  ;;  %v48_v8 = vsub.s32 0, %v1740_v7  ;;  %v1778_v23 = vld [vmem:[%s1933_s1] sm:$0xff]  ;;  %s1651_s1 = smov 64   ;;  %s1655_s18 = smov 48  }
  0x12   :  { %1441 = vmatprep.subr.mxu1 %v1718_v3  ;;  %s1656_s19 = smov 72   ;;  %s1657_s20 = smov 104  }
  0x13   :  { %1442 = vmatpush3.msra.mxu1 %v1718_v3  ;;  %v49_v10 = vrot.slane %v1743_v9, %v48_v8  ;;  %s1658_s21 = smov 40   ;;  %s1659_s22 = smov 32  }
  0x14   :  { %1443 = vmatprep.subr.mxu1 %v1727_v4  ;;  %s1660_s23 = smov 16   ;;  %s1661_s24 = smov 8  }
  0x15   :  { %1444 = vmatpush3.msra.mxu1 %v1727_v4  ;;  %s1662_s25 = smov 24  }
  0x16   :  { %1446 = vmatmul.mubr.msk.f32.vlgmr.msra.gmra.mxu1 %vm50_vm0, %v1734_v5 }
  0xd6   :  { %v1447_v11 = vpop.f32.mrf.mxu1 }
  0xd7   :  { %v1746_v12 = vadd.f32 %v1447_v11, %v49_v10 }
  0xd8   :  { %v123_v13 = vpop.f32.mrf.mxu1 }
  0xd9   :  { %v1748_v14 = vadd.f32 %v123_v13, %v49_v10  ;;  %338 = vrot.lane.b32.xlu1 %v1746_v12, %s1648_s0  ;;  %136 = vrot.lane.b32.xlu0 %v1746_v12, %s1649_s9 }
  0xdb   :  { %1452 = vmatprep.mubr.msk.f32.mxu1 %vm138_vm1, %v1748_v14 }
  0xdd   :  { %336 = vrot.lane.b32.xlu1 %v1748_v14, %s1648_s0  ;;  %134 = vrot.lane.b32.xlu0 %v1748_v14, %s1649_s9 }
  0xe1   :  { %334 = vrot.lane.b32.xlu1 %v1746_v12, %s1650_s10  ;;  %332 = vrot.lane.b32.xlu0 %v1748_v14, %s1650_s10 }
 0x14b   :  { %v137_v15 = vpop.permute.xlu0 %136  ;;  %v339_v16 = vpop.permute.xlu1 %338 }
 0x14c   :  { %1448 = vmatprep.subr.msk.mxu1 %vm138_vm1, %v137_v15 }
 0x14d   :  { %1449 = vmatpush3.xpose.msk.msra.mxu1 %vm138_vm1, %v137_v15 }
 0x14f   :  { %v135_v17 = vpop.permute.xlu0 %134  ;;  %v337_v19 = vpop.permute.xlu1 %336 }
 0x150   :  { %1450 = vmatprep.subr.msk.mxu1 %vm138_vm1, %v135_v17 }
 0x151   :  { %1451 = vmatpush3.xpose.msk.msra.mxu1 %vm138_vm1, %v135_v17 }
 0x152   :  { %1462 = vmatprep.subr.msk.mxu1 %vm138_vm1, %v339_v16 }
 0x153   :  { %v333_v18 = vpop.permute.xlu0 %332  ;;  %v335_v20 = vpop.permute.xlu1 %334 }
 0x154   :  { %1453 = vmatmul.mubr.msk.f32.vlgmr.msra.gmra.mxu1 %vm138_vm1, %v1746_v12 }
 0x155   :  { %1463 = vmatpush3.xpose.msk.msra.mxu1 %vm138_vm1, %v339_v16  ;;  %1466 = vmatprep.mubr.msk.f32.mxu1 %vm138_vm1, %v333_v18 }
 0x156   :  { %1464 = vmatprep.subr.msk.mxu1 %vm138_vm1, %v337_v19 }
 0x159   :  { %1465 = vmatpush3.xpose.msk.msra.mxu1 %vm138_vm1, %v337_v19 }
 0x15c   :  { %1467 = vmatmul.mubr.msk.f32.vlgmr.msra.gmra.mxu1 %vm138_vm1, %v335_v20 }
 0x214   :  { %v1454_v22 = vpop.f32.mrf.mxu1 }
 0x215   :  { %v219_v24 = vadd.f32 %v1454_v22, %v1773_v21 }
 0x216   :  { %v213_v25 = vpop.f32.mrf.mxu1 }
 0x217   :  { %v214_v26 = vadd.f32 %v213_v25, %v1778_v23  ;;  %v226_v27 = vsel %vm222_vm2, %v219_v24, -inf }
 0x218   :  { %227 = vmax.xlane.f32.xlu1 %v226_v27 }
 0x219   :  { %v223_v28 = vsel %vm222_vm2, %v214_v26, -inf }
 0x21a   :  { %224 = vmax.xlane.f32.xlu0 %v223_v28 }
 0x21c   :  { %v1468_v29 = vpop.f32.mrf.mxu1 }
 0x21d   :  { %v420_v32 = vadd.f32 %v1468_v29, %v1773_v21 }
 0x21e   :  { %v414_v30 = vpop.f32.mrf.mxu1 }
 0x21f   :  { %v415_v31 = vadd.f32 %v414_v30, %v1778_v23  ;;  %v426_v34 = vsel %vm222_vm2, %v420_v32, -inf }
 0x221   :  { %v423_v33 = vsel %vm222_vm2, %v415_v31, -inf }
 0x222   :  { %424 = vmax.xlane.f32.xlu0 %v423_v33 }
 0x226   :  { %427 = vmax.xlane.f32.xlu0 %v426_v34 }
 0x229   :  { %247 = vrot.lane.b32.xlu1 %v1746_v12, %s1651_s1 }
 0x22d   :  { %447 = vrot.lane.b32.xlu1 %v1746_v12, %s1652_s15 }
 0x231   :  { %445 = vrot.lane.b32.xlu1 %v1748_v14, %s1652_s15 }
 0x23c   :  { %245 = vrot.lane.b32.xlu0 %v1748_v14, %s1651_s1 }
 0x2a1   :  { %v228_v35 = vpop.xlane.xlu1 %227 }
 0x2a2   :  { %v230_v36 = vsub.f32 %v219_v24, %v228_v35 }
 0x2a3   :  { %v225_v37 = vpop.xlane.xlu0 %224 }
 0x2a4   :  { %v233_v38 = vmul.f32 1.442695, %v230_v36  ;;  %v229_v39 = vsub.f32 %v214_v26, %v225_v37 }
 0x2a5   :  { %v248_v40 = vpop.permute.xlu1 %247 }
 0x2a6   :  { %1563 = vpow2.f32 %v233_v38  ;;  %v231_v41 = vmul.f32 1.442695, %v229_v39  ;;  %1455 = vmatprep.subr.mxu0 %v248_v40 }
 0x2a7   :  { %1456 = vmatpush3.msra.mxu0 %v248_v40 }
 0x2a8   :  { %1565 = vpow2.f32 %v231_v41 }
 0x2a9   :  { %v448_v50 = vpop.permute.xlu1 %447 }
 0x2ab   :  { %v425_v42 = vpop.xlane.xlu0 %424 }
 0x2ac   :  { %v429_v54 = vsub.f32 %v415_v31, %v425_v42 }
 0x2ad   :  { %v446_v58 = vpop.permute.xlu1 %445 }
 0x2ae   :  { %v431_v55 = vmul.f32 1.442695, %v429_v54 }
 0x2af   :  { %v428_v43 = vpop.xlane.xlu0 %427 }
 0x2b0   :  { %v430_v44 = vsub.f32 %v420_v32, %v428_v43 }
 0x2b2   :  { %v433_v45 = vmul.f32 1.442695, %v430_v44 }
 0x2b3   :  { %v1564_v46 = vpop.eup %1563  ;;  %v246_v47 = vpop.permute.xlu0 %245 }
 0x2b4   :  { %1567 = vpow2.f32 %v433_v45  ;;  %1457 = vmatprep.subr.mxu0 %v246_v47  ;;  %v238_v48 = vsel %vm222_vm2, %v1564_v46, 0.0 }
 0x2b5   :  { %v1566_v49 = vpop.eup %1565  ;;  %239 = vadd.xlane.f32.xlu0 %v238_v48  ;;  %1458 = vmatpush3.msra.mxu0 %v246_v47  ;;  %1569 = vpow2.f32 %v431_v55 }
 0x2b6   :  { %1469 = vmatprep.subr.mxu0 %v448_v50  ;;  %v235_v51 = vsel %vm222_vm2, %v1566_v49, 0.0 }
 0x2b7   :  { %236 = vadd.xlane.f32.xlu1 %v235_v51 }
 0x2c1   :  { %v1568_v52 = vpop.eup %1567 }
 0x2c2   :  { %v438_v53 = vsel %vm222_vm2, %v1568_v52, 0.0  ;;  %v1570_v56 = vpop.eup %1569 }
 0x2c3   :  { %439 = vadd.xlane.f32.xlu0 %v438_v53  ;;  %v435_v57 = vsel %vm222_vm2, %v1570_v56, 0.0 }
 0x2c8   :  { %536 = vrot.lane.b32.xlu1 %v1748_v14, %s1653_s16 }
 0x2d9   :  { %538 = vrot.lane.b32.xlu0 %v1746_v12, %s1653_s16 }
 0x2dd   :  { %532 = vrot.lane.b32.xlu0 %v1748_v14, %s1654_s17 }
 0x2ec   :  { %436 = vadd.xlane.f32.xlu1 %v435_v57 }
 0x2fd   :  { %534 = vrot.lane.b32.xlu1 %v1746_v12, %s1654_s17 }
 0x33e   :  { %v240_v59 = vpop.xlane.xlu0 %239 }
 0x33f   :  { %1571 = vrcp.f32 %v240_v59 }
 0x340   :  { %v237_v60 = vpop.xlane.xlu1 %236 }
 0x341   :  { %1573 = vrcp.f32 %v237_v60 }
 0x344   :  { %v537_v11 = vpop.permute.xlu1 %536 }
 0x34c   :  { %v1572_v61 = vpop.eup %1571  ;;  %v440_v63 = vpop.xlane.xlu0 %439 }
 0x34d   :  { %v244_v8 = vmul.f32 %v1572_v61, %v1564_v46  ;;  %1575 = vrcp.f32 %v440_v63 }
 0x34e   :  { %v1574_v62 = vpop.eup %1573 }
 0x34f   :  { %v243_v6 = vmul.f32 %v1574_v62, %v1566_v49 }
 0x350   :  { %v539_v10 = vpop.permute.xlu0 %538 }
 0x351   :  { %1459 = vmatprep.mubr.msk.f32.mxu0 %vm222_vm2, %v243_v6 }
 0x352   :  { %1460 = vmatmul.mubr.msk.f32.vlgmr.msra.gmra.mxu0 %vm222_vm2, %v244_v8 }
 0x353   :  { %1470 = vmatpush3.msra.mxu0 %v448_v50 }
 0x354   :  { %1471 = vmatprep.subr.mxu0 %v446_v58  ;;  %v533_v19 = vpop.permute.xlu0 %532 }
 0x355   :  { %1472 = vmatpush3.msra.mxu0 %v446_v58 }
 0x356   :  { %1476 = vmatprep.subr.msk.mxu0 %vm138_vm1, %v539_v10 }
 0x35a   :  { %v1576_v15 = vpop.eup %1575 }
 0x35b   :  { %v444_v18 = vmul.f32 %v1576_v15, %v1568_v52 }
 0x375   :  { %v437_v13 = vpop.xlane.xlu1 %436 }
 0x376   :  { %1577 = vrcp.f32 %v437_v13 }
 0x379   :  { %v535_v20 = vpop.permute.xlu1 %534 }
 0x383   :  { %v1578_v16 = vpop.eup %1577 }
 0x384   :  { %v443_v17 = vmul.f32 %v1578_v16, %v1570_v56 }
 0x386   :  { %1473 = vmatprep.mubr.msk.f32.mxu0 %vm222_vm2, %v443_v17 }
 0x387   :  { %1474 = vmatmul.mubr.msk.f32.vlgmr.msra.gmra.mxu0 %vm222_vm2, %v444_v18 }
 0x388   :  { %1477 = vmatpush3.xpose.msk.msra.mxu0 %vm138_vm1, %v539_v10  ;;  %1480 = vmatprep.mubr.msk.f32.mxu0 %vm138_vm1, %v533_v19 }
 0x389   :  { %1478 = vmatprep.subr.msk.mxu0 %vm138_vm1, %v537_v11 }
 0x38c   :  { %1479 = vmatpush3.xpose.msk.msra.mxu0 %vm138_vm1, %v537_v11 }
 0x38f   :  { %1481 = vmatmul.mubr.msk.f32.vlgmr.msra.gmra.mxu0 %vm138_vm1, %v535_v20 }
 0x412   :  { %v1810_v22 = vpop.f32.mrf.mxu0 }
 0x414   :  { %v1812_v24 = vpop.f32.mrf.mxu0 }
 0x447   :  { %v1814_v25 = vpop.f32.mrf.mxu0 }
 0x449   :  { %v1816_v26 = vpop.f32.mrf.mxu0 }
 0x44f   :  { %v1482_v27 = vpop.f32.mrf.mxu0 }
 0x450   :  { %v620_v28 = vadd.f32 %v1482_v27, %v1773_v21 }
 0x451   :  { %v614_v29 = vpop.f32.mrf.mxu0 }
 0x452   :  { %v615_v30 = vadd.f32 %v614_v29, %v1778_v23  ;;  %v626_v31 = vsel %vm222_vm2, %v620_v28, -inf }
 0x453   :  { %627 = vmax.xlane.f32.xlu1 %v626_v31 }
 0x454   :  { %v623_v32 = vsel %vm222_vm2, %v615_v30, -inf }
 0x455   :  { %624 = vmax.xlane.f32.xlu0 %v623_v32 }
 0x464   :  { %647 = vrot.lane.b32.xlu1 %v1746_v12, %s1655_s18 }
 0x468   :  { %738 = vrot.lane.b32.xlu1 %v1746_v12, %s1656_s19 }
 0x46c   :  { %736 = vrot.lane.b32.xlu1 %v1748_v14, %s1656_s19 }
 0x470   :  { %734 = vrot.lane.b32.xlu1 %v1746_v12, %s1657_s20 }
 0x4dc   :  { %v628_v33 = vpop.xlane.xlu1 %627 }
 0x4dd   :  { %v630_v34 = vsub.f32 %v620_v28, %v628_v33 }
 0x4de   :  { %v625_v35 = vpop.xlane.xlu0 %624 }
 0x4df   :  { %v633_v36 = vmul.f32 1.442695, %v630_v34  ;;  %v629_v37 = vsub.f32 %v615_v30, %v625_v35 }
 0x4e0   :  { %v648_v38 = vpop.permute.xlu1 %647 }
 0x4e1   :  { %1579 = vpow2.f32 %v633_v36  ;;  %v631_v39 = vmul.f32 1.442695, %v629_v37  ;;  %1483 = vmatprep.subr.mxu1 %v648_v38 }
 0x4e2   :  { %1484 = vmatpush3.msra.mxu1 %v648_v38 }
 0x4e3   :  { %1581 = vpow2.f32 %v631_v39 }
 0x4e4   :  { %v739_v47 = vpop.permute.xlu1 %738 }
 0x4e8   :  { %v737_v53 = vpop.permute.xlu1 %736 }
 0x4ec   :  { %v735_v54 = vpop.permute.xlu1 %734 }
 0x4ee   :  { %v1580_v40 = vpop.eup %1579 }
 0x4ef   :  { %v638_v41 = vsel %vm222_vm2, %v1580_v40, 0.0 }
 0x4f0   :  { %v1582_v42 = vpop.eup %1581  ;;  %639 = vadd.xlane.f32.xlu0 %v638_v41  ;;  %v965_v41 = vsub.s32 1, %v1740_v7 }
 0x4f1   :  { %v635_v43 = vsel %vm222_vm2, %v1582_v42, 0.0 }
 0x4f4   :  { %636 = vadd.xlane.f32.xlu0 %v635_v43 }
 0x50a   :  { %645 = vrot.lane.b32.xlu0 %v1748_v14, %s1655_s18 }
 0x50e   :  { %732 = vrot.lane.b32.xlu0 %v1748_v14, %s1657_s20 }
 0x579   :  { %v640_v44 = vpop.xlane.xlu0 %639 }
 0x57a   :  { %1583 = vrcp.f32 %v640_v44 }
 0x57d   :  { %v637_v45 = vpop.xlane.xlu0 %636 }
 0x57e   :  { %1585 = vrcp.f32 %v637_v45 }
 0x581   :  { %v646_v46 = vpop.permute.xlu0 %645 }
 0x582   :  { %1485 = vmatprep.subr.mxu1 %v646_v46 }
 0x583   :  { %1486 = vmatpush3.msra.mxu1 %v646_v46 }
 0x584   :  { %1490 = vmatprep.subr.msk.mxu1 %vm138_vm1, %v739_v47 }
 0x585   :  { %v733_v52 = vpop.permute.xlu0 %732 }
 0x587   :  { %v1584_v48 = vpop.eup %1583 }
 0x588   :  { %v644_v51 = vmul.f32 %v1584_v48, %v1580_v40 }
 0x58b   :  { %v1586_v49 = vpop.eup %1585 }
 0x58c   :  { %v643_v50 = vmul.f32 %v1586_v49, %v1582_v42 }
 0x58e   :  { %1487 = vmatprep.mubr.msk.f32.mxu1 %vm222_vm2, %v643_v50 }
 0x58f   :  { %1488 = vmatmul.mubr.msk.f32.vlgmr.msra.gmra.mxu1 %vm222_vm2, %v644_v51 }
 0x590   :  { %1491 = vmatpush3.xpose.msk.msra.mxu1 %vm138_vm1, %v739_v47  ;;  %1494 = vmatprep.mubr.msk.f32.mxu1 %vm138_vm1, %v733_v52 }
 0x591   :  { %1492 = vmatprep.subr.msk.mxu1 %vm138_vm1, %v737_v53 }
 0x594   :  { %1493 = vmatpush3.xpose.msk.msra.mxu1 %vm138_vm1, %v737_v53 }
 0x597   :  { %1495 = vmatmul.mubr.msk.f32.vlgmr.msra.gmra.mxu1 %vm138_vm1, %v735_v54 }
 0x64f   :  { %v1489_v55 = vpop.f32.mrf.mxu1 }
 0x651   :  { %v723_v56 = vpop.f32.mrf.mxu1 }
 0x657   :  { %v1496_v57 = vpop.f32.mrf.mxu1 }
 0x658   :  { %v820_v58 = vadd.f32 %v1496_v57, %v1773_v21 }
 0x659   :  { %v814_v59 = vpop.f32.mrf.mxu1 }
 0x65a   :  { %v815_v60 = vadd.f32 %v814_v59, %v1778_v23  ;;  %v826_v61 = vsel %vm222_vm2, %v820_v58, -inf  ;;  %v40_v59 = vld [vmem:[%s1934_s2 + $0x18] sm:$0xff] }
 0x65b   :  { %827 = vmax.xlane.f32.xlu1 %v826_v61  ;;  %v1199_v61 = vld [vmem:[%s1935_s3 + $0x38] sm:$0xff] }
 0x65c   :  { %v823_v62 = vsel %vm222_vm2, %v815_v60, -inf }
 0x65d   :  { %824 = vmax.xlane.f32.xlu0 %v823_v62  ;;  %v1198_v62 = vld [vmem:[%s1935_s3 + $0x30] sm:$0xff] }
 0x66c   :  { %847 = vrot.lane.b32.xlu1 %v1746_v12, %s1658_s21 }
 0x670   :  { %977 = vrot.lane.b32.xlu1 %v1701_v0, %s1659_s22 }
 0x674   :  { %975 = vrot.lane.b32.xlu1 %v1706_v1, %s1659_s22 }
 0x678   :  { %973 = vrot.lane.b32.xlu1 %v1718_v3, %s1659_s22 }
 0x67c   :  { %942 = vrot.lane.b32.xlu1 %v723_v56, %s1660_s23 }
 0x6e4   :  { %v828_v21 = vpop.xlane.xlu1 %827 }
 0x6e5   :  { %v830_v23 = vsub.f32 %v820_v58, %v828_v21  ;;  %v42_v58 = vld [vmem:[%s1934_s2 + $0x28] sm:$0xff] }
 0x6e6   :  { %v825_v63 = vpop.xlane.xlu0 %824  ;;  %v1197_v21 = vld [vmem:[%s1935_s3 + $0x28] sm:$0xff] }
 0x6e7   :  { %v833_v6 = vmul.f32 1.442695, %v830_v23  ;;  %v829_v8 = vsub.f32 %v815_v60, %v825_v63  ;;  %v38_v60 = vld [vmem:[%s1934_s2 + $0x8] sm:$0xff]  ;;  %v1196_v23 = vld [vmem:[%s1935_s3 + $0x20] sm:$0xff] }
 0x6e8   :  { %v848_v10 = vpop.permute.xlu1 %847 }
 0x6e9   :  { %1587 = vpow2.f32 %v833_v6  ;;  %v831_v11 = vmul.f32 1.442695, %v829_v8  ;;  %1497 = vmatprep.subr.mxu0 %v848_v10 }
 0x6ea   :  { %1498 = vmatpush3.msra.mxu0 %v848_v10 }
 0x6eb   :  { %1589 = vpow2.f32 %v831_v11 }
 0x6ec   :  { %v978_v17 = vpop.permute.xlu1 %977 }
 0x6f0   :  { %v976_v19 = vpop.permute.xlu1 %975 }
 0x6f6   :  { %v1588_v12 = vpop.eup %1587 }
 0x6f7   :  { %v838_v0 = vsel %vm222_vm2, %v1588_v12, 0.0 }
 0x6f8   :  { %v1590_v13 = vpop.eup %1589  ;;  %839 = vadd.xlane.f32.xlu0 %v838_v0  ;;  %v1095_v0 = vsub.s32 4, %v1740_v7 }
 0x6f9   :  { %v835_v1 = vsel %vm222_vm2, %v1590_v13, 0.0 }
 0x6fc   :  { %836 = vadd.xlane.f32.xlu0 %v835_v1  ;;  %v1096_v1 = vrot.slane %v1743_v9, %v1095_v0 }
 0x712   :  { %845 = vrot.lane.b32.xlu0 %v1748_v14, %s1658_s21 }
 0x716   :  { %934 = vrot.lane.b32.xlu0 %v1816_v26, %s1661_s24 }
 0x71a   :  { %936 = vrot.lane.b32.xlu0 %v1814_v25, %s1661_s24 }
 0x71e   :  { %944 = vrot.lane.b32.xlu0 %v1489_v55, %s1660_s23 }
 0x722   :  { %971 = vrot.lane.b32.xlu0 %v1727_v4, %s1659_s22  ;;  %v974_v4 = vpop.permute.xlu1 %973 }
 0x726   :  { %v943_v32 = vpop.permute.xlu1 %942 }
 0x781   :  { %v840_v3 = vpop.xlane.xlu0 %839 }
 0x782   :  { %1591 = vrcp.f32 %v840_v3 }
 0x785   :  { %v837_v15 = vpop.xlane.xlu0 %836 }
 0x786   :  { %1593 = vrcp.f32 %v837_v15 }
 0x789   :  { %v846_v16 = vpop.permute.xlu0 %845 }
 0x78a   :  { %1499 = vmatprep.subr.mxu0 %v846_v16 }
 0x78b   :  { %1500 = vmatpush3.msra.mxu0 %v846_v16 }
 0x78c   :  { %1504 = vmatprep.subr.mxu0 %v978_v17 }
 0x78d   :  { %v935_v25 = vpop.permute.xlu0 %934 }
 0x78e   :  { %v956_v33 = vsel %vm138_vm1, %v1812_v24, %v935_v25  ;;  %v966_v24 = vrot.slane %v1743_v9, %v965_v41  ;;  %v1194_v25 = vld [vmem:[%s1935_s3 + $0x10] sm:$0xff] }
 0x78f   :  { %v1592_v14 = vpop.eup %1591  ;;  %v958_v35 = vsel %vm222_vm2, %v956_v33, %v943_v32 }
 0x790   :  { %v844_v26 = vmul.f32 %v1592_v14, %v1588_v12 }
 0x791   :  { %v937_v27 = vpop.permute.xlu0 %936 }
 0x792   :  { %v957_v37 = vsel %vm138_vm1, %v1810_v22, %v937_v27  ;;  %v1193_v27 = vld [vmem:[%s1935_s3 + $0x8] sm:$0xff] }
 0x793   :  { %v1594_v18 = vpop.eup %1593 }
 0x794   :  { %v843_v20 = vmul.f32 %v1594_v18, %v1590_v13  ;;  %v1101_v13 = vsub.s32 5, %v1740_v7 }
 0x795   :  { %v945_v28 = vpop.permute.xlu0 %944 }
 0x796   :  { %1501 = vmatprep.mubr.msk.f32.mxu0 %vm222_vm2, %v843_v20  ;;  %v959_v38 = vsel %vm222_vm2, %v957_v37, %v945_v28  ;;  %v1102_v16 = vrot.slane %v1743_v9, %v1101_v13  ;;  %v1192_v28 = vld [vmem:[%s1935_s3] sm:$0xff]  ;;  %v1202_v37 = vsub.s32 3, %v1740_v7 }
 0x797   :  { %1502 = vmatmul.mubr.msk.f32.vlgmr.msra.gmra.mxu0 %vm222_vm2, %v844_v26 }
 0x798   :  { %1505 = vmatpush3.msra.mxu0 %v978_v17 }
 0x799   :  { %1506 = vmatprep.subr.mxu0 %v976_v19  ;;  %v972_v29 = vpop.permute.xlu0 %971 }
 0x79a   :  { %1507 = vmatpush3.msra.mxu0 %v976_v19 }
 0x79b   :  { %1508 = vmatprep.subr.mxu0 %v974_v4 }
 0x79c   :  { %1509 = vmatpush3.msra.mxu0 %v974_v4  ;;  %v1195_v4 = vld [vmem:[%s1935_s3 + $0x18] sm:$0xff]  ;;  %s1663_s3 = smov [#allocation5]  }
 0x79d   :  { %1510 = vmatprep.subr.mxu0 %v972_v29  ;;  %s1333_s21 = sshll.u32 %s1663_s3, 4  ;;  %s1334_s21 = int_to_ptr.vmem [resolvable:$true] %s1333_s21 }
 0x79e   :  { %1511 = vmatpush3.msra.mxu0 %v972_v29  ;;  %v1107_v29 = vsub.s32 2, %v1740_v7  ;;  %s1623_s22 = scalar_lea.vmem %s1334_s21, 256  ;;  %p1628_p6 = scmp.lt.s32.totalorder %s1334_s21, %s1334_s21 }
 0x79f   :  { %1526 = vmatprep.subr.mxu0 %v1199_v61  ;;  %p1624_p5 = scmp.ne.s32.totalorder %s1334_s21, %s1623_s22  ;;  %p1629_p7 = scmp.lt.s32.totalorder %s1623_s22, %s1623_s22 }
 0x7a1   :  { %p1630_p8 = por %p1629_p7, %p1628_p6 }
 0x7a3   :  { %p1631_p9 = pnand %p1630_p8, %p1624_p5 }
 0x857   :  { %v1503_v30 = vpop.f32.mrf.mxu0 }
 0x859   :  { %v923_v31 = vpop.f32.mrf.mxu0 }
 0x85a   :  { %950 = vrot.lane.b32.xlu1 %v923_v31, %s1662_s25 }
 0x85e   :  { %952 = vrot.lane.b32.xlu1 %v1503_v30, %s1662_s25  ;;  %v1108_v30 = vrot.slane %v1743_v9, %v1107_v29 }
 0x8cc   :  { %v951_v34 = vpop.permute.xlu1 %950 }
 0x8cd   :  { %v961_v36 = vsel %vm960_vm3, %v958_v35, %v951_v34 }
 0x8ce   :  { %1512 = vmatprep.mubr.msk.f32.mxu0 %vm50_vm0, %v961_v36 }
 0x8d0   :  { %v953_v39 = vpop.permute.xlu1 %952 }
 0x8d1   :  { %v962_v40 = vsel %vm960_vm3, %v959_v38, %v953_v39  ;;  %v1203_v38 = vrot.slane %v1743_v9, %v1202_v37 }
 0x8d2   :  { %1513 = vmatmul.mubr.msk.f32.vlgmr.msra.gmra.mxu0 %vm50_vm0, %v962_v40 }
 0x8d3   :  { %1527 = vmatpush3.msra.mxu0 %v1199_v61 }
 0x8d4   :  { %1528 = vmatprep.subr.mxu0 %v1198_v62 }
 0x8d5   :  { %1529 = vmatpush3.msra.mxu0 %v1198_v62 }
 0x8d6   :  { %1530 = vmatprep.subr.mxu0 %v1197_v21 }
 0x8d7   :  { %1531 = vmatpush3.msra.mxu0 %v1197_v21 }
 0x8d8   :  { %1532 = vmatprep.subr.mxu0 %v1196_v23 }
 0x8d9   :  { %1533 = vmatpush3.msra.mxu0 %v1196_v23 }
 0x8da   :  { %1534 = vmatprep.subr.mxu0 %v1195_v4 }
 0x8db   :  { %1535 = vmatpush3.msra.mxu0 %v1195_v4 }
 0x8dc   :  { %1536 = vmatprep.subr.mxu0 %v1194_v25 }
 0x8dd   :  { %1537 = vmatpush3.msra.mxu0 %v1194_v25 }
 0x8de   :  { %1538 = vmatprep.subr.mxu0 %v1193_v27 }
 0x8df   :  { %1539 = vmatpush3.msra.mxu0 %v1193_v27 }
 0x8e0   :  { %1540 = vmatprep.subr.mxu0 %v1192_v28 }
 0x8e1   :  { %1541 = vmatpush3.msra.mxu0 %v1192_v28 }
 0x992   :  { %v1514_v42 = vpop.f32.mrf.mxu0 }
 0x993   :  { %v1061_v43 = vadd.f32 %v1514_v42, %v966_v24 }
 0x994   :  { %v1055_v44 = vpop.f32.mrf.mxu0 }
 0x995   :  { %v1056_v45 = vadd.f32 %v1055_v44, %v966_v24  ;;  %v1065_v46 = vadd.f32 %v1061_v43, %v1734_v5 }
 0x997   :  { %v1069_v47 = vsel %vm50_vm0, %v1065_v46, 0.0  ;;  %v1064_v22 = vadd.f32 %v1056_v45, %v1712_v2  ;;  %v44_v2 = vld [vmem:[%s1934_s2 + $0x38] sm:$0xff] }
 0x998   :  { %1070 = vadd.xlane.f32.xlu1 %v1069_v47  ;;  %1515 = vmatprep.subr.mxu1 %v44_v2 }
 0x999   :  { %v1066_v48 = vsel %vm50_vm0, %v1064_v22, 0.0  ;;  %1516 = vmatpush3.msra.mxu1 %v44_v2 }
 0x99a   :  { %1067 = vadd.xlane.f32.xlu0 %v1066_v48  ;;  %1517 = vmatprep.subr.mxu1 %v42_v58 }
 0x99b   :  { %1518 = vmatpush3.msra.mxu1 %v42_v58 }
 0x99c   :  { %1519 = vmatprep.subr.mxu1 %v40_v59 }
 0x99d   :  { %1520 = vmatpush3.msra.mxu1 %v40_v59  ;;  %v1316_v59 = vsub.s32 6, %v1740_v7 }
 0x99e   :  { %1521 = vmatprep.subr.mxu1 %v38_v60 }
 0x99f   :  { %1522 = vmatpush3.msra.mxu1 %v38_v60  ;;  %v1322_v60 = vsub.s32 7, %v1740_v7  ;;  %v1317_v61 = vrot.slane %v1743_v9, %v1316_v59 }
 0x9a1   :  { %v1323_v23 = vrot.slane %v1743_v9, %v1322_v60 }
 0xa21   :  { %v1071_v49 = vpop.xlane.xlu1 %1070 }
 0xa22   :  { %v1074_v50 = vmul.f32 0.03125, %v1071_v49 }
 0xa23   :  { %v1068_v51 = vpop.xlane.xlu0 %1067 }
 0xa24   :  { %v1073_v52 = vmul.f32 0.03125, %v1068_v51  ;;  %v1076_v53 = vsub.f32 %v1065_v46, %v1074_v50 }
 0xa26   :  { %v1075_v54 = vsub.f32 %v1064_v22, %v1073_v52  ;;  %v1078_v57 = vmul.f32 %v1076_v53, %v1076_v53 }
 0xa28   :  { %v1077_v55 = vmul.f32 %v1075_v54, %v1075_v54  ;;  %v1082_v5 = vsel %vm50_vm0, %v1078_v57, 0.0 }
 0xa2a   :  { %v1079_v56 = vsel %vm50_vm0, %v1077_v55, 0.0 }
 0xa2b   :  { %1080 = vadd.xlane.f32.xlu0 %v1079_v56 }
 0xa2f   :  { %1083 = vadd.xlane.f32.xlu0 %v1082_v5 }
 0xab4   :  { %v1081_v63 = vpop.xlane.xlu0 %1080 }
 0xab5   :  { %v1085_v6 = vmul.f32 0.03125, %v1081_v63 }
 0xab7   :  { %v1087_v8 = vadd.f32 1e-05, %v1085_v6 }
 0xab8   :  { %v1084_v10 = vpop.xlane.xlu0 %1083 }
 0xab9   :  { %1595 = vrsqrt.f32 %v1087_v8  ;;  %v1086_v11 = vmul.f32 0.03125, %v1084_v10 }
 0xabb   :  { %v1088_v12 = vadd.f32 1e-05, %v1086_v11 }
 0xabd   :  { %1597 = vrsqrt.f32 %v1088_v12 }
 0xac6   :  { %v1596_v3 = vpop.eup %1595 }
 0xac7   :  { %v1091_v15 = vmul.f32 %v1596_v3, %v1075_v54 }
 0xac9   :  { %v1097_v17 = vmul.f32 %v1096_v1, %v1091_v15 }
 0xaca   :  { %v1598_v14 = vpop.eup %1597 }
 0xacb   :  { %v1092_v18 = vmul.f32 %v1598_v14, %v1076_v53  ;;  %v1103_v19 = vadd.f32 %v1102_v16, %v1097_v17 }
 0xacd   :  { %v1098_v20 = vmul.f32 %v1096_v1, %v1092_v18  ;;  %1523 = vmatprep.mubr.msk.f32.mxu1 %vm50_vm0, %v1103_v19 }
 0xacf   :  { %v1104_v26 = vadd.f32 %v1102_v16, %v1098_v20 }
 0xad1   :  { %1524 = vmatmul.mubr.msk.f32.vlgmr.msra.gmra.mxu1 %vm50_vm0, %v1104_v26 }
 0xb91   :  { %v1525_v31 = vpop.f32.mrf.mxu1 }
 0xb92   :  { %v1187_v32 = vadd.f32 %v1525_v31, %v1108_v30 }
 0xb93   :  { %v1181_v33 = vpop.f32.mrf.mxu1 }
 0xb94   :  { %v1182_v34 = vadd.f32 %v1181_v33, %v1108_v30  ;;  %v1191_v36 = vmax.f32 %v1187_v32, 0.0 }
 0xb96   :  { %v1190_v35 = vmax.f32 %v1182_v34, 0.0 }
 0xb98   :  { %1542 = vmatprep.mubr.msk.f32.mxu0 %vm1204_vm4, %v1190_v35 }
 0xb99   :  { %1543 = vmatmul.mubr.msk.f32.vlgmr.msra.gmra.mxu0 %vm1204_vm4, %v1191_v36 }
 0xc59   :  { %v1544_v39 = vpop.f32.mrf.mxu0 }
 0xc5a   :  { %v1283_v40 = vadd.f32 %v1544_v39, %v1203_v38 }
 0xc5b   :  { %v1277_v41 = vpop.f32.mrf.mxu0 }
 0xc5c   :  { %v1278_v24 = vadd.f32 %v1277_v41, %v1203_v38  ;;  %v1287_v42 = vadd.f32 %v1283_v40, %v1104_v26 }
 0xc5e   :  { %v1291_v43 = vsel %vm50_vm0, %v1287_v42, 0.0  ;;  %v1286_v44 = vadd.f32 %v1278_v24, %v1103_v19 }
 0xc5f   :  { %1292 = vadd.xlane.f32.xlu0 %v1291_v43 }
 0xc60   :  { %v1288_v45 = vsel %vm50_vm0, %v1286_v44, 0.0 }
 0xc61   :  { %1289 = vadd.xlane.f32.xlu1 %v1288_v45 }
 0xce8   :  { %v1293_v46 = vpop.xlane.xlu0 %1292 }
 0xce9   :  { %v1295_v47 = vmul.f32 0.03125, %v1293_v46 }
 0xcea   :  { %v1290_v22 = vpop.xlane.xlu1 %1289 }
 0xceb   :  { %v1297_v48 = vsub.f32 %v1287_v42, %v1295_v47  ;;  %v1294_v49 = vmul.f32 0.03125, %v1290_v22 }
 0xced   :  { %v1296_v50 = vsub.f32 %v1286_v44, %v1294_v49  ;;  %v1299_v51 = vmul.f32 %v1297_v48, %v1297_v48 }
 0xcef   :  { %v1303_v52 = vsel %vm50_vm0, %v1299_v51, 0.0  ;;  %v1298_v53 = vmul.f32 %v1296_v50, %v1296_v50 }
 0xcf0   :  { %1304 = vadd.xlane.f32.xlu0 %v1303_v52 }
 0xcf1   :  { %v1300_v54 = vsel %vm50_vm0, %v1298_v53, 0.0 }
 0xcf2   :  { %1301 = vadd.xlane.f32.xlu1 %v1300_v54 }
 0xd79   :  { %v1305_v55 = vpop.xlane.xlu0 %1304 }
 0xd7a   :  { %v1307_v56 = vmul.f32 0.03125, %v1305_v55 }
 0xd7b   :  { %v1302_v57 = vpop.xlane.xlu1 %1301 }
 0xd7c   :  { %v1309_v5 = vadd.f32 1e-05, %v1307_v56  ;;  %v1306_v2 = vmul.f32 0.03125, %v1302_v57 }
 0xd7e   :  { %1599 = vrsqrt.f32 %v1309_v5  ;;  %v1308_v58 = vadd.f32 1e-05, %v1306_v2 }
 0xd80   :  { %1601 = vrsqrt.f32 %v1308_v58 }
 0xd8b   :  { %v1600_v62 = vpop.eup %1599 }
 0xd8c   :  { %v1313_v21 = vmul.f32 %v1600_v62, %v1297_v48 }
 0xd8d   :  { %v1602_v63 = vpop.eup %1601 }
 0xd8e   :  { %v1312_v6 = vmul.f32 %v1602_v63, %v1296_v50  ;;  %v1319_v8 = vmul.f32 %v1317_v61, %v1313_v21 }
 0xd90   :  { %v1318_v10 = vmul.f32 %v1317_v61, %v1312_v6  ;;  %v1325_v11 = vadd.f32 %v1323_v23, %v1319_v8 }
 0xd92   :  { %v1324_v12 = vadd.f32 %v1323_v23, %v1318_v10  ;;  %1327 = vst.msk [vmem:[#allocation5 + $0x8] sm:$0xff] %vm50_vm0, %v1325_v11 }
 0xd94   :  { %1326 = vst.msk [vmem:[#allocation5] sm:$0xff] %vm50_vm0, %v1324_v12 }
 0xd95   :  { %1634 = shalt.err (!%p1631_p9)
}
 0xd96   :  { %s1664_s23 = smov 128  }
 0xd97   :  { %1339 = dma.vmem_to_hbm [thread:$0]  %s1334_s21, 256, %s1937_s5, [#allocation4], %s1664_s23, %s1664_s23, %s1661_s24  }
 0xd98   :  { %1645 = dma.done.wait [#allocation4], 256  }
 0xd99   :  { %1646 = vsyncadd [#allocation4], 4294967040 }
 0xd9a   :  { %1343 = vsyncpa [#allocation3], 1 }
 0xd9b   :  { %1344 = vsyncpa [#allocation4], 1 }

</bundles_post_ra>
